<compile_context>
chip_gen: v5e
topology: v5e:2x2
jax: 0.10.0
libtpu: 0.0.40
codegen_flags: <defaults>
</compile_context>

<pallas_src>
import numpy as np
import jax
import jax.numpy as jnp
from jax import lax
from jax.experimental import pallas as pl
from jax.experimental.pallas import tpu as pltpu


# ----------------------------------------------------------------------------
# Kernel: fused actor+critic MLP + diag-Gaussian log_prob, packed output
# ----------------------------------------------------------------------------
def actor_critic_kernel(
    state_ref, action_ref,
    w1_ref, b1_ref, w2_ref, b2_ref, w3_ref, b3_ref,
    inv_var_ref, lpc_ref,
    out_ref,
):
    x = state_ref[...]            # [TB, S]   f32
    act = action_ref[...]         # [TB, A]   f32
    A = act.shape[-1]

    # Fused actor||critic MLP: 3 matmuls on block-diagonal weights.
    h = jnp.tanh(jnp.dot(x, w1_ref[...], preferred_element_type=jnp.float32)
                 + b1_ref[...])                               # [TB, 2H]
    h = jnp.tanh(jnp.dot(h, w2_ref[...], preferred_element_type=jnp.float32)
                 + b2_ref[...])                               # [TB, 2H]
    z = jnp.dot(h, w3_ref[...], preferred_element_type=jnp.float32) \
        + b3_ref[...]                                         # [TB, A+1]

    mu = jnp.tanh(z[:, :A])        # actor head (final Tanh)        [TB, A]
    value = z[:, A:A + 1]          # critic head (no activation)    [TB, 1]

    # MultivariateNormal(mu, diag(var)).log_prob(action); constants prefolded:
    #   lpc = A*log(2*pi) + sum(log var)
    diff = act - mu
    maha = jnp.sum(diff * diff * inv_var_ref[...], axis=-1, keepdims=True)
    logp = -0.5 * (maha + lpc_ref[...])                       # [TB, 1]

    # Pack into one lane-dense slab: lane 0 = log_prob, lane 1 = value.
    lane = lax.broadcasted_iota(jnp.int32, out_ref.shape, 1)
    out_ref[...] = jnp.where(lane == 0, logp,
                             jnp.where(lane == 1, value, jnp.float32(0.0)))


# ----------------------------------------------------------------------------
# Parameters (PyTorch-Linear-like layout: weights stored [in, out])
# ----------------------------------------------------------------------------
def init_params(key, state_dim, action_dim, n_latent_var):
    def linear(k, fan_in, fan_out):
        kw, kb = jax.random.split(k)
        bound = 1.0 / np.sqrt(fan_in)
        w = jax.random.uniform(kw, (fan_in, fan_out), jnp.float32, -bound, bound)
        b = jax.random.uniform(kb, (1, fan_out), jnp.float32, -bound, bound)
        return w, b

    keys = jax.random.split(key, 6)
    aw1, ab1 = linear(keys[0], state_dim, n_latent_var)
    aw2, ab2 = linear(keys[1], n_latent_var, n_latent_var)
    aw3, ab3 = linear(keys[2], n_latent_var, action_dim)
    vw1, vb1 = linear(keys[3], state_dim, n_latent_var)
    vw2, vb2 = linear(keys[4], n_latent_var, n_latent_var)
    vw3, vb3 = linear(keys[5], n_latent_var, 1)
    # action_var = full((action_dim,), 0.5 * 0.5)
    action_var = jnp.full((1, action_dim), 0.25, dtype=jnp.float32)
    return (aw1, ab1, aw2, ab2, aw3, ab3,
            vw1, vb1, vw2, vb2, vw3, vb3, action_var)


def fuse_params(params):
    """Build fused block-diagonal weights + precomputed Gaussian constants."""
    (aw1, ab1, aw2, ab2, aw3, ab3,
     vw1, vb1, vw2, vb2, vw3, vb3, action_var) = params
    H = aw1.shape[1]
    A = aw3.shape[1]
    zHH = jnp.zeros((H, H), jnp.float32)

    w1 = jnp.concatenate([aw1, vw1], axis=1)                          # [S, 2H]
    b1 = jnp.concatenate([ab1, vb1], axis=1)                          # [1, 2H]
    w2 = jnp.concatenate(
        [jnp.concatenate([aw2, zHH], axis=1),
         jnp.concatenate([zHH, vw2], axis=1)], axis=0)                # [2H, 2H]
    b2 = jnp.concatenate([ab2, vb2], axis=1)                          # [1, 2H]
    w3 = jnp.concatenate(
        [jnp.concatenate([aw3, jnp.zeros((H, 1), jnp.float32)], axis=1),
         jnp.concatenate([jnp.zeros((H, A), jnp.float32), vw3], axis=1)],
        axis=0)                                                       # [2H, A+1]
    b3 = jnp.concatenate([ab3, vb3], axis=1)                          # [1, A+1]

    inv_var = (1.0 / action_var).astype(jnp.float32)                  # [1, A]
    logdet = jnp.sum(jnp.log(action_var))
    log_2pi = np.float32(np.log(2.0 * np.pi))
    lpc = (A * log_2pi + logdet).reshape(1, 1).astype(jnp.float32)    # [1, 1]
    ent_const = (0.5 * A * (1.0 + log_2pi) + 0.5 * logdet).astype(jnp.float32)
    return (w1, b1, w2, b2, w3, b3, inv_var, lpc, ent_const)


# ----------------------------------------------------------------------------
# Wrapper
# ----------------------------------------------------------------------------
def _round_up(x, m):
    return ((x + m - 1) // m) * m


def actor_critic_evaluate(state, action, fused, tb_max=512):
    """Returns (log_prob [B], value [B], entropy [B]) like ActorCritic.evaluate."""
    w1, b1, w2, b2, w3, b3, inv_var, lpc, ent_const = fused
    B, S = state.shape
    A = action.shape[1]

    # Batch tile: multiple of 8 sublanes, capped at tb_max.
    TB = min(tb_max, _round_up(B, 8))
    Bp = _round_up(B, TB)
    if Bp != B:
        state = jnp.pad(state, ((0, Bp - B), (0, 0)))
        action = jnp.pad(action, ((0, Bp - B), (0, 0)))
    n_blocks = pl.cdiv(Bp, TB)

    full = lambda arr: pl.BlockSpec(arr.shape, lambda i: (0, 0))
    in_specs = [
        pl.BlockSpec((TB, S), lambda i: (i, 0)),      # state (batch-tiled)
        pl.BlockSpec((TB, A), lambda i: (i, 0)),      # action (batch-tiled)
        full(w1), full(b1), full(w2), full(b2), full(w3), full(b3),
        full(inv_var), full(lpc),
    ]
    out_spec = pl.BlockSpec((TB, 128), lambda i: (i, 0))  # lane-dense slab

    out = pl.pallas_call(
        actor_critic_kernel,
        out_shape=jax.ShapeDtypeStruct((Bp, 128), jnp.float32),
        grid=(n_blocks,),
        in_specs=in_specs,
        out_specs=out_spec,
        compiler_params=pltpu.CompilerParams(
            dimension_semantics=("parallel",)),
    )(state, action, w1, b1, w2, b2, w3, b3, inv_var, lpc)

    logp = out[:B, 0]
    value = out[:B, 1]
    entropy = jnp.broadcast_to(ent_const, (B,))   # pure function of action_var
    return logp, value, entropy


# ----------------------------------------------------------------------------
# Pure-JAX reference (mirrors the unfused PyTorch module)
# ----------------------------------------------------------------------------
def reference_evaluate(state, action, params):
    (aw1, ab1, aw2, ab2, aw3, ab3,
     vw1, vb1, vw2, vb2, vw3, vb3, var) = params
    h = jnp.tanh(state @ aw1 + ab1)
    h = jnp.tanh(h @ aw2 + ab2)
    mu = jnp.tanh(h @ aw3 + ab3)
    g = jnp.tanh(state @ vw1 + vb1)
    g = jnp.tanh(g @ vw2 + vb2)
    val = g @ vw3 + vb3
    A = var.shape[-1]
    log_2pi = jnp.log(2.0 * jnp.pi)
    logdet = jnp.sum(jnp.log(var))
    maha = jnp.sum((action - mu) ** 2 / var, axis=-1)
    logp = -0.5 * (maha + A * log_2pi + logdet)
    ent = 0.5 * A * (1.0 + log_2pi) + 0.5 * logdet
    return logp, val[:, 0], jnp.full((state.shape[0],), ent)


if __name__ == "__main__":
    B, state_dim, action_dim, n_latent_var = 8, 16, 4, 32

    key = jax.random.PRNGKey(0)
    kp, ks, ka = jax.random.split(key, 3)
    params = init_params(kp, state_dim, action_dim, n_latent_var)
    fused = fuse_params(params)
    state = jax.random.normal(ks, (B, state_dim), dtype=jnp.float32)
    action = jax.random.normal(ka, (B, action_dim), dtype=jnp.float32)

    logp, value, ent = actor_critic_evaluate(state, action, fused)
    jax.block_until_ready((logp, value, ent))

    logp_ref, value_ref, ent_ref = reference_evaluate(state, action, params)
    np.testing.assert_allclose(np.asarray(logp), np.asarray(logp_ref),
                               rtol=1e-5, atol=1e-5)
    np.testing.assert_allclose(np.asarray(value), np.asarray(value_ref),
                               rtol=1e-5, atol=1e-5)
    np.testing.assert_allclose(np.asarray(ent), np.asarray(ent_ref),
                               rtol=1e-5, atol=1e-5)

    print("KERNEL_OK")
</pallas_src>

<mosaic_0001>
module attributes {stable_mosaic.version = 11 : i64} {
  func.func @actor_critic_kernel(%arg0: i32, %arg1: memref<8x16xf32, #tpu.memory_space<vmem>>, %arg2: memref<8x4xf32, #tpu.memory_space<vmem>>, %arg3: memref<16x64xf32, #tpu.memory_space<vmem>>, %arg4: memref<1x64xf32, #tpu.memory_space<vmem>>, %arg5: memref<64x64xf32, #tpu.memory_space<vmem>>, %arg6: memref<1x64xf32, #tpu.memory_space<vmem>>, %arg7: memref<64x5xf32, #tpu.memory_space<vmem>>, %arg8: memref<1x5xf32, #tpu.memory_space<vmem>>, %arg9: memref<1x4xf32, #tpu.memory_space<vmem>>, %arg10: memref<1x1xf32, #tpu.memory_space<vmem>>, %arg11: memref<8x128xf32, #tpu.memory_space<vmem>>) attributes {dimension_semantics = [#tpu.dimension_semantics<parallel>], iteration_bounds = array<i64: 1>, scalar_prefetch = 0 : i64, scratch_operands = 0 : i64, tpu.core_type = #tpu.core_type<tc>, window_params = [{transform_indices = @transform_0, window_bounds = array<i64: 8, 16>}, {transform_indices = @transform_1, window_bounds = array<i64: 8, 4>}, {pipeline_mode = #tpu.pipeline_mode<synchronous>, transform_indices = @transform_2, window_bounds = array<i64: 16, 64>}, {pipeline_mode = #tpu.pipeline_mode<synchronous>, transform_indices = @transform_3, window_bounds = array<i64: 1, 64>}, {pipeline_mode = #tpu.pipeline_mode<synchronous>, transform_indices = @transform_4, window_bounds = array<i64: 64, 64>}, {pipeline_mode = #tpu.pipeline_mode<synchronous>, transform_indices = @transform_5, window_bounds = array<i64: 1, 64>}, {pipeline_mode = #tpu.pipeline_mode<synchronous>, transform_indices = @transform_6, window_bounds = array<i64: 64, 5>}, {pipeline_mode = #tpu.pipeline_mode<synchronous>, transform_indices = @transform_7, window_bounds = array<i64: 1, 5>}, {pipeline_mode = #tpu.pipeline_mode<synchronous>, transform_indices = @transform_8, window_bounds = array<i64: 1, 4>}, {pipeline_mode = #tpu.pipeline_mode<synchronous>, transform_indices = @transform_9, window_bounds = array<i64: 1, 1>}, {transform_indices = @transform_10, window_bounds = array<i64: 8, 128>}]} {
    %c0 = arith.constant 0 : index
    %c0_0 = arith.constant 0 : index
    %0 = vector.load %arg1[%c0, %c0_0] : memref<8x16xf32, #tpu.memory_space<vmem>>, vector<8x16xf32>
    %c0_1 = arith.constant 0 : index
    %c0_2 = arith.constant 0 : index
    %1 = vector.load %arg2[%c0_1, %c0_2] : memref<8x4xf32, #tpu.memory_space<vmem>>, vector<8x4xf32>
    %c0_3 = arith.constant 0 : index
    %c0_4 = arith.constant 0 : index
    %2 = vector.load %arg3[%c0_3, %c0_4] : memref<16x64xf32, #tpu.memory_space<vmem>>, vector<16x64xf32>
    %cst = arith.constant dense<0.000000e+00> : vector<8x64xf32>
    %3 = tpu.matmul %0, %2, %cst {dimension_numbers = #tpu.dot_dimension_numbers<[1], [0], [0], [1], [0, 0, 1, 1], [], []>} : vector<8x16xf32>, vector<16x64xf32>, vector<8x64xf32> -> vector<8x64xf32>
    %c0_5 = arith.constant 0 : index
    %c0_6 = arith.constant 0 : index
    %4 = vector.load %arg4[%c0_5, %c0_6] : memref<1x64xf32, #tpu.memory_space<vmem>>, vector<1x64xf32>
    %5 = vector.broadcast %4 : vector<1x64xf32> to vector<8x64xf32>
    %6 = arith.addf %3, %5 : vector<8x64xf32>
    %7 = math.tanh %6 : vector<8x64xf32>
    %c0_7 = arith.constant 0 : index
    %c0_8 = arith.constant 0 : index
    %8 = vector.load %arg5[%c0_7, %c0_8] : memref<64x64xf32, #tpu.memory_space<vmem>>, vector<64x64xf32>
    %cst_9 = arith.constant dense<0.000000e+00> : vector<8x64xf32>
    %9 = tpu.matmul %7, %8, %cst_9 {dimension_numbers = #tpu.dot_dimension_numbers<[1], [0], [0], [1], [0, 0, 1, 1], [], []>} : vector<8x64xf32>, vector<64x64xf32>, vector<8x64xf32> -> vector<8x64xf32>
    %c0_10 = arith.constant 0 : index
    %c0_11 = arith.constant 0 : index
    %10 = vector.load %arg6[%c0_10, %c0_11] : memref<1x64xf32, #tpu.memory_space<vmem>>, vector<1x64xf32>
    %11 = vector.broadcast %10 : vector<1x64xf32> to vector<8x64xf32>
    %12 = arith.addf %9, %11 : vector<8x64xf32>
    %13 = math.tanh %12 : vector<8x64xf32>
    %c0_12 = arith.constant 0 : index
    %c0_13 = arith.constant 0 : index
    %14 = vector.load %arg7[%c0_12, %c0_13] : memref<64x5xf32, #tpu.memory_space<vmem>>, vector<64x5xf32>
    %cst_14 = arith.constant dense<0.000000e+00> : vector<8x5xf32>
    %15 = tpu.matmul %13, %14, %cst_14 {dimension_numbers = #tpu.dot_dimension_numbers<[1], [0], [0], [1], [0, 0, 1, 1], [], []>} : vector<8x64xf32>, vector<64x5xf32>, vector<8x5xf32> -> vector<8x5xf32>
    %c0_15 = arith.constant 0 : index
    %c0_16 = arith.constant 0 : index
    %16 = vector.load %arg8[%c0_15, %c0_16] : memref<1x5xf32, #tpu.memory_space<vmem>>, vector<1x5xf32>
    %17 = vector.broadcast %16 : vector<1x5xf32> to vector<8x5xf32>
    %18 = arith.addf %15, %17 : vector<8x5xf32>
    %19 = vector.extract_strided_slice %18 {offsets = [0, 0], sizes = [8, 4], strides = [1, 1]} : vector<8x5xf32> to vector<8x4xf32>
    %20 = math.tanh %19 : vector<8x4xf32>
    %21 = vector.extract_strided_slice %18 {offsets = [0, 4], sizes = [8, 1], strides = [1, 1]} : vector<8x5xf32> to vector<8x1xf32>
    %22 = arith.subf %1, %20 : vector<8x4xf32>
    %23 = arith.mulf %22, %22 : vector<8x4xf32>
    %c0_17 = arith.constant 0 : index
    %c0_18 = arith.constant 0 : index
    %24 = vector.load %arg9[%c0_17, %c0_18] : memref<1x4xf32, #tpu.memory_space<vmem>>, vector<1x4xf32>
    %25 = vector.broadcast %24 : vector<1x4xf32> to vector<8x4xf32>
    %26 = arith.mulf %23, %25 : vector<8x4xf32>
    %cst_19 = arith.constant dense<0.000000e+00> : vector<8xf32>
    %27 = vector.multi_reduction <add>, %26, %cst_19 [1] : vector<8x4xf32> to vector<8xf32>
    %28 = vector.shape_cast %27 : vector<8xf32> to vector<8x1xf32>
    %c0_20 = arith.constant 0 : index
    %c0_21 = arith.constant 0 : index
    %29 = vector.load %arg10[%c0_20, %c0_21] : memref<1x1xf32, #tpu.memory_space<vmem>>, vector<1x1xf32>
    %30 = vector.broadcast %29 : vector<1x1xf32> to vector<8x1xf32>
    %31 = arith.addf %28, %30 : vector<8x1xf32>
    %cst_22 = arith.constant -5.000000e-01 : f32
    %32 = vector.broadcast %cst_22 : f32 to vector<8x1xf32>
    %33 = arith.mulf %32, %31 : vector<8x1xf32>
    %34 = tpu.iota {dimensions = array<i32: 1>} : vector<8x128xi32>
    %c0_i32 = arith.constant 0 : i32
    %35 = vector.broadcast %c0_i32 : i32 to vector<8x128xi32>
    %36 = arith.cmpi eq, %34, %35 : vector<8x128xi32>
    %c1_i32 = arith.constant 1 : i32
    %37 = vector.broadcast %c1_i32 : i32 to vector<8x128xi32>
    %38 = arith.cmpi eq, %34, %37 : vector<8x128xi32>
    %cst_23 = arith.constant 0.000000e+00 : f32
    %39 = vector.shape_cast %21 : vector<8x1xf32> to vector<8x1xf32>
    %40 = vector.broadcast %39 : vector<8x1xf32> to vector<8x128xf32>
    %41 = vector.broadcast %cst_23 : f32 to vector<8x128xf32>
    %42 = arith.select %38, %40, %41 : vector<8x128xi1>, vector<8x128xf32>
    %43 = vector.shape_cast %33 : vector<8x1xf32> to vector<8x1xf32>
    %44 = vector.broadcast %43 : vector<8x1xf32> to vector<8x128xf32>
    %45 = arith.select %36, %44, %42 : vector<8x128xi1>, vector<8x128xf32>
    %c0_24 = arith.constant 0 : index
    %c0_25 = arith.constant 0 : index
    %46 = vector.load %arg11[%c0_24, %c0_25] : memref<8x128xf32, #tpu.memory_space<vmem>>, vector<8x128xf32>
    tpu.vector_store %arg11[%c0_24, %c0_25], %45 {strides = array<i32>} : memref<8x128xf32, #tpu.memory_space<vmem>>, vector<8x128xf32>,
    return
  }
  func.func @transform_0(%arg0: i32) -> (i32, i32) {
    %c0_i32 = arith.constant 0 : i32
    %c0_i32_0 = arith.constant 0 : i32
    return %arg0, %c0_i32 : i32, i32
  }
  func.func @transform_1(%arg0: i32) -> (i32, i32) {
    %c0_i32 = arith.constant 0 : i32
    %c0_i32_0 = arith.constant 0 : i32
    return %arg0, %c0_i32 : i32, i32
  }
  func.func @transform_2(%arg0: i32) -> (i32, i32) {
    %c0_i32 = arith.constant 0 : i32
    %c0_i32_0 = arith.constant 0 : i32
    %c0_i32_1 = arith.constant 0 : i32
    return %c0_i32, %c0_i32_0 : i32, i32
  }
  func.func @transform_3(%arg0: i32) -> (i32, i32) {
    %c0_i32 = arith.constant 0 : i32
    %c0_i32_0 = arith.constant 0 : i32
    %c0_i32_1 = arith.constant 0 : i32
    return %c0_i32, %c0_i32_0 : i32, i32
  }
  func.func @transform_4(%arg0: i32) -> (i32, i32) {
    %c0_i32 = arith.constant 0 : i32
    %c0_i32_0 = arith.constant 0 : i32
    %c0_i32_1 = arith.constant 0 : i32
    return %c0_i32, %c0_i32_0 : i32, i32
  }
  func.func @transform_5(%arg0: i32) -> (i32, i32) {
    %c0_i32 = arith.constant 0 : i32
    %c0_i32_0 = arith.constant 0 : i32
    %c0_i32_1 = arith.constant 0 : i32
    return %c0_i32, %c0_i32_0 : i32, i32
  }
  func.func @transform_6(%arg0: i32) -> (i32, i32) {
    %c0_i32 = arith.constant 0 : i32
    %c0_i32_0 = arith.constant 0 : i32
    %c0_i32_1 = arith.constant 0 : i32
    return %c0_i32, %c0_i32_0 : i32, i32
  }
  func.func @transform_7(%arg0: i32) -> (i32, i32) {
    %c0_i32 = arith.constant 0 : i32
    %c0_i32_0 = arith.constant 0 : i32
    %c0_i32_1 = arith.constant 0 : i32
    return %c0_i32, %c0_i32_0 : i32, i32
  }
  func.func @transform_8(%arg0: i32) -> (i32, i32) {
    %c0_i32 = arith.constant 0 : i32
    %c0_i32_0 = arith.constant 0 : i32
    %c0_i32_1 = arith.constant 0 : i32
    return %c0_i32, %c0_i32_0 : i32, i32
  }
  func.func @transform_9(%arg0: i32) -> (i32, i32) {
    %c0_i32 = arith.constant 0 : i32
    %c0_i32_0 = arith.constant 0 : i32
    %c0_i32_1 = arith.constant 0 : i32
    return %c0_i32, %c0_i32_0 : i32, i32
  }
  func.func @transform_10(%arg0: i32) -> (i32, i32) {
    %c0_i32 = arith.constant 0 : i32
    %c0_i32_0 = arith.constant 0 : i32
    return %arg0, %c0_i32 : i32, i32
  }
}

</mosaic_0001>

<bundles_post_ra>
// kernel: tpu_custom_call.1
= control target key start
LH: loop header
LB: loop body
LE: loop exit
PB: predicated region body
PF: predicated region fallthrough
CT: control target
= control target key end

     0   :  { %s424_s0 = inlined_call_operand.vmem [shape: f32[8,16], index: 0, kind: input, shape index: {}]   ;;  %s425_s1 = inlined_call_operand.vmem [shape: f32[8,4], index: 1, kind: input, shape index: {}]   ;;  %s426_s2 = inlined_call_operand.hbm [shape: f32[16,64], index: 2, kind: input, shape index: {}]   ;;  %s427_s3 = inlined_call_operand.vmem [shape: f32[1,64], index: 3, kind: input, shape index: {}]   ;;  %s428_s4 = inlined_call_operand.vmem [shape: f32[64,64], index: 4, kind: input, shape index: {}]   ;;  %s429_s5 = inlined_call_operand.vmem [shape: f32[1,64], index: 5, kind: input, shape index: {}]   ;;  %s430_s6 = inlined_call_operand.vmem [shape: f32[64,5], index: 6, kind: input, shape index: {}]   ;;  %s431_s7 = inlined_call_operand.vmem [shape: f32[1,5], index: 7, kind: input, shape index: {}]   ;;  %s432_s8 = inlined_call_operand.vmem [shape: f32[1,4], index: 8, kind: input, shape index: {}]   ;;  %s433_s9 = inlined_call_operand.<no memory space> [shape: f32[1,1], index: 9, kind: input, shape index: {}]   ;;  %s434_s10 = inlined_call_operand.hbm [shape: f32[8,128], index: 10, kind: output, shape index: {}]  }
   0x1   :  { %v15_v0 = vstv %s433_s9 }
   0x2   :  { %16 = vst [vmem:[#allocation2] sm:$0x1] %v15_v0 }
   0x3   :  { %17 = vsyncpa [#allocation4], 0 }
   0x4   :  { %18 = vsyncpa [#allocation5], 0  ;;  %s27_s17 = sshll.u32 %s426_s2, 4  ;;  %s286_s18 = smov [#allocation3]   ;;  %s28_s17 = int_to_ptr.hbm [resolvable:$true] %s27_s17 }
   0x5   :  { %s29_s19 = sshll.u32 %s286_s18, 4  ;;  %s287_s20 = smov 128   ;;  %s30_s19 = int_to_ptr.vmem [resolvable:$true] %s29_s19 }
   0x6   :  { %s288_s21 = smov 8  }
   0x7   :  { %35 = dma.hbm_to_vmem [thread:$0]  %s28_s17, 256, %s30_s19, [#allocation4], %s287_s20, %s287_s20, %s288_s21  }
   0x8   :  { %282 = dma.done.wait [#allocation4], 256  }
   0x9   :  { %283 = vsyncadd [#allocation4], 4294967040  ;;  %v57_v1 = vld [vmem:[#allocation3 + $0x8] sm:$0xff]  ;;  %v56_v2 = vld [vmem:[#allocation3] sm:$0xff]  ;;  %vm62_vm0 = vcmask 130048   ;;  %vm99_vm1 = vcmask 523264   ;;  %v177_v44 = vlaneseq }
   0xa   :  { %80 = vmatpush.msra.mxu0 %v57_v1  ;;  %v54_v3 = vld [vmem:[%s424_s0] sm:$0xff]  ;;  %v94_v4 = vld [vmem:[%s428_s4 + $0x38] sm:$0xff]  ;;  %v93_v5 = vld [vmem:[%s428_s4 + $0x30] sm:$0xff]  ;;  %v289_v28 = vmov 4   ;;  %vm167_vm2 = vcmask 31744   ;;  %v290_v39 = vmov 0  }
   0xb   :  { %111 = vmatpush.msra.mxu1 %v94_v4  ;;  %v92_v6 = vld [vmem:[%s428_s4 + $0x28] sm:$0xff]  ;;  %v91_v7 = vld [vmem:[%s428_s4 + $0x20] sm:$0xff]  ;;  %v90_v8 = vld [vmem:[%s428_s4 + $0x18] sm:$0xff]  ;;  %220 = vset.pattern.permute.xlu0 %v289_v28  ;;  %v178_v45 = vand.u32 127, %v177_v44  ;;  %s201_s17 = sshll.u32 %s434_s10, 4  ;;  %s202_s17 = int_to_ptr.hbm [resolvable:$true] %s201_s17 }
   0xc   :  { %81 = vmatpush.msra.mxu0 %v56_v2  ;;  %v89_v9 = vld [vmem:[%s428_s4 + $0x10] sm:$0xff]  ;;  %v88_v10 = vld [vmem:[%s428_s4 + $0x8] sm:$0xff]  ;;  %v87_v11 = vld [vmem:[%s428_s4] sm:$0xff]  ;;  %221 = vset.pattern.permute.xlu1 %v290_v39 }
   0xd   :  { %211 = vmatmul.msk.f32.vlgmr.msra.gmra.mxu0 %vm62_vm0, %v54_v3  ;;  %112 = vmatpush.msra.mxu1 %v93_v5  ;;  %v131_v12 = vld [vmem:[%s430_s6 + $0x38] sm:$0xff]  ;;  %v130_v13 = vld [vmem:[%s430_s6 + $0x30] sm:$0xff]  ;;  %v129_v14 = vld [vmem:[%s430_s6 + $0x28] sm:$0xff]  ;;  %vm180_vm3 = vcmp.eq.s32.totalorder %v178_v45, 1  ;;  %vm179_vm4 = vcmp.eq.s32.totalorder %v178_v45, 0 }
   0xe   :  { %147 = vmatpush.msra.mxu2 %v131_v12  ;;  %v223_v15 = vld [vmem:[%s427_s3] ss:$0 sm:$0xff]  ;;  %v127_v20 = vld [vmem:[%s430_s6 + $0x18] sm:$0xff]  ;;  %v126_v21 = vld [vmem:[%s430_s6 + $0x10] sm:$0xff] }
   0xf   :  { %113 = vmatpush.msra.mxu1 %v92_v6  ;;  %v128_v19 = vld [vmem:[%s430_s6 + $0x20] sm:$0xff]  ;;  %v125_v22 = vld [vmem:[%s430_s6 + $0x8] sm:$0xff] }
  0x10   :  { %148 = vmatpush.msra.mxu2 %v130_v13  ;;  %v124_v23 = vld [vmem:[%s430_s6] sm:$0xff] }
  0x11   :  { %114 = vmatpush.msra.mxu1 %v91_v7  ;;  %v224_v24 = vld [vmem:[%s429_s5] ss:$0 sm:$0xff] }
  0x12   :  { %149 = vmatpush.msra.mxu2 %v129_v14  ;;  %v225_v29 = vld [vmem:[%s431_s7] ss:$0 sm:$0xff] }
  0x13   :  { %115 = vmatpush.msra.mxu1 %v90_v8  ;;  %v55_v32 = vld [vmem:[%s425_s1] sm:$0xff]  ;;  %s291_s1 = smov [#allocation6]  }
  0x14   :  { %150 = vmatpush.msra.mxu2 %v128_v19  ;;  %v226_v35 = vld [vmem:[%s432_s8] ss:$0 sm:$0xff]  ;;  %s199_s7 = sshll.u32 %s291_s1, 4  ;;  %s200_s7 = int_to_ptr.vmem [resolvable:$true] %s199_s7 }
  0x15   :  { %116 = vmatpush.msra.mxu1 %v89_v9  ;;  %v227_v40 = vld [vmem:[#allocation2] ss:$0 sm:$0xff] }
  0x16   :  { %151 = vmatpush.msra.mxu2 %v127_v20 }
  0x17   :  { %117 = vmatpush.msra.mxu1 %v88_v10 }
  0x18   :  { %152 = vmatpush.msra.mxu2 %v126_v21 }
  0x19   :  { %118 = vmatpush.msra.mxu1 %v87_v11 }
  0x1a   :  { %153 = vmatpush.msra.mxu2 %v125_v22 }
  0x1c   :  { %154 = vmatpush.msra.mxu2 %v124_v23 }
  0x8a   :  { %v83_v16 = vpop.f32.mrf.mxu0 }
  0x8b   :  { %v84_v17 = vadd.f32 %v223_v15, %v83_v16 }
  0x8d   :  { %228 = vtanh.f32 %v84_v17 }
  0x93   :  { %v229_v18 = vpop.eup %228 }
  0x94   :  { %212 = vmatmul.msk.f32.vlgmr.msra.gmra.mxu1 %vm99_vm1, %v229_v18 }
 0x111   :  { %v120_v25 = vpop.f32.mrf.mxu1 }
 0x112   :  { %v121_v26 = vadd.f32 %v224_v24, %v120_v25 }
 0x114   :  { %230 = vtanh.f32 %v121_v26 }
 0x11a   :  { %v231_v27 = vpop.eup %230 }
 0x11b   :  { %213 = vmatmul.msk.f32.vlgmr.msra.gmra.mxu2 %vm99_vm1, %v231_v27 }
 0x19e   :  { %v156_v30 = vpop.f32.mrf.mxu2 }
 0x19f   :  { %v157_v31 = vadd.f32 %v225_v29, %v156_v30 }
 0x1a1   :  { %232 = vtanh.f32 %v157_v31 }
 0x1a7   :  { %v233_v33 = vpop.eup %232 }
 0x1a8   :  { %v160_v34 = vsub.f32 %v55_v32, %v233_v33 }
 0x1aa   :  { %v161_v36 = vmul.f32 %v160_v34, %v160_v34 }
 0x1ac   :  { %v166_v37 = vmul.f32 %v226_v35, %v161_v36 }
 0x1ae   :  { %v168_v38 = vsel %vm167_vm2, %v166_v37, 0.0 }
 0x1af   :  { %169 = vadd.xlane.f32.xlu0 %v168_v38 }
 0x1c3   :  { %183 = vperm.xlu0 %220, %v157_v31  }
 0x1cb   :  { %222 = vset.pattern.permute.xlu0 %v290_v39 }
 0x222   :  { %v170_v41 = vpop.xlane.xlu0 %169 }
 0x223   :  { %v175_v42 = vadd.f32 %v227_v40, %v170_v41 }
 0x225   :  { %v176_v43 = vmul.f32 -0.5, %v175_v42 }
 0x227   :  { %189 = vperm.xlu1 %221, %v176_v43  }
 0x235   :  { %v184_v46 = vpop.permute.xlu0 %183 }
 0x236   :  { %v186_v47 = vsel %vm180_vm3, %v184_v46, 0.0 }
 0x299   :  { %v190_v48 = vpop.permute.xlu1 %189 }
 0x29a   :  { %v192_v49 = vsel %vm179_vm4, %v190_v48, %v186_v47 }
 0x29b   :  { %193 = vst [vmem:[#allocation6] sm:$0xff] %v192_v49 }
 0x29c   :  { %204 = dma.vmem_to_hbm [thread:$0]  %s200_s7, 128, %s202_s17, [#allocation5]  }
 0x29d   :  { %284 = dma.done.wait [#allocation5], 128  }
 0x29e   :  { %285 = vsyncadd [#allocation5], 4294967168 }
 0x29f   :  { %209 = vsyncpa [#allocation4], 1 }
 0x2a0   :  { %210 = vsyncpa [#allocation5], 1 }

</bundles_post_ra>
